<compile_context>
chip_gen: v5e
topology: v5e:2x2
jax: 0.10.0
libtpu: 0.0.40
codegen_flags: <defaults>
</compile_context>

<pallas_src>
import functools

import jax
import jax.numpy as jnp
from jax.experimental import pallas as pl
from jax.experimental.pallas import tpu as pltpu


def _gltae_kernel(mask_sc_ref, xr_ref, wc_ref, wkh_ref, vecs_ref, mflat_ref,
                  feat_ref, attn_ref, *, n_head, inv_temp):
    """One (batch, pixel-tile) grid step.

    mask_sc_ref : (B, N) int32   SMEM scalar-prefetched pad mask (1 = padded)
    xr_ref      : (N, C, TM)     time x channels x lane-dense pixels
    wc_ref      : (C, Din)       folded fc1_q -> BN(eval) -> fc2 weight
    wkh_ref     : (H, Din, d_k)  fc1_k weight per head (transposed)
    vecs_ref    : (C, 2)         col 0: folded query bias, col 1: fc1_k bias
    mflat_ref   : (Din, N*Din)   folded LightweightConv1d + temporal-mean map
    feat_ref    : (C, TM)        out: concatenated features
    attn_ref    : (H, N, TM)     out: attention weights
    """
    n_t, c, tm = xr_ref.shape
    din = c // 2
    d_k = c // n_head
    dh = din // n_head
    bi = pl.program_id(0)

    # ---- attention half of the channels (slice at the ref, stay lane-dense) ----
    x_ltae = xr_ref[:, :din, :].astype(jnp.float32)                      # (N, Din, TM)

    # master query: single folded affine (fc1_q -> BatchNorm1d(eval) -> fc2)
    q_mean = jnp.mean(x_ltae, axis=0)                                    # (Din, TM)
    q = jnp.dot(wc_ref[...], q_mean, preferred_element_type=jnp.float32)  # (C, TM)
    vecs = vecs_ref[...]
    q = q + vecs[:, 0:1]                                                 # + folded bias
    bk = vecs[:, 1:2]                                                    # (C, 1)

    # per-timestep pad mask, read as scalars from SMEM (1.0 where padded)
    mvec = jnp.concatenate(
        [mask_sc_ref[bi, t].astype(jnp.float32).reshape(1, 1) for t in range(n_t)],
        axis=0)                                                          # (N, 1)
    keep = 1.0 - mvec
    fill = jnp.float32(-1e3) * mvec

    # ---------------- master-query attention, per head ----------------
    wkh = wkh_ref[...]                                                   # (H, Din, d_k)
    for h in range(n_head):
        lo = h * d_k
        q_h = q[lo:lo + d_k, :]                                          # (d_k, TM)
        # scores[t, p] = (q_h[:, p] . (W_k x_ltae[t, :, p] + b_k)) / temp
        qk = jnp.dot(wkh[h], q_h, preferred_element_type=jnp.float32)    # (Din, TM)
        qb = jnp.sum(bk[lo:lo + d_k, :] * q_h, axis=0, keepdims=True)    # (1, TM)
        s = jnp.sum(x_ltae * qk[None, :, :], axis=1)                     # (N, TM)
        s = (s + qb) * inv_temp
        s = s * keep + fill                                              # masked_fill(-1e3)
        s = s - jnp.max(s, axis=0, keepdims=True)
        p = jnp.exp(s)
        p = p * pl.reciprocal(jnp.sum(p, axis=0, keepdims=True), approx=True)
        attn_ref[h] = p.astype(attn_ref.dtype)
        v_h = x_ltae[:, h * dh:(h + 1) * dh, :]                          # (N, dh, TM)
        out_h = jnp.sum(p[:, None, :] * v_h, axis=0)                     # (dh, TM)
        feat_ref[h * dh:(h + 1) * dh, :] = out_h.astype(feat_ref.dtype)

    # ---- conv half: folded LightweightConv1d + temporal mean, one MXU matmul ----
    x_conv = xr_ref[:, din:, :].astype(jnp.float32).reshape(n_t * din, tm)  # (N*Din, TM)
    conv = jnp.dot(mflat_ref[...], x_conv, preferred_element_type=jnp.float32)
    feat_ref[din:, :] = conv.astype(feat_ref.dtype)


def _pick_tile(hw, target):
    """Lane-tile for the flattened spatial axis.

    Prefer a tile that (a) divides h*w, so no jnp.pad copy is needed, and
    (b) is a multiple of 128 unless it covers the whole axis.  Fall back to
    padding h*w up to a multiple of a 128-aligned tile.
    """
    target = max(128, (int(target) // 128) * 128)
    if hw <= target:
        return hw, hw                      # one full-extent tile per batch
    best = 0
    for t in range(128, target + 1, 128):
        if hw % t == 0:
            best = t
    if best:
        return best, hw
    tile = target
    hw_pad = -(-hw // tile) * tile
    return tile, hw_pad


def gltae_decoding(x, key_padding_mask, params, *, n_head=1, target_tile_hw=4096):
    b, n, c, h, w = x.shape
    assert c % 2 == 0 and c % n_head == 0 and (c // 2) % n_head == 0
    din = c // 2
    d_k = c // n_head
    hw = h * w

    # 'b n c h w -> b n c (h w)' is a pure reshape: no HBM relayout.
    xr = x.reshape(b, n, c, hw)

    tile, hw_pad = _pick_tile(hw, target_tile_hw)
    if hw_pad != hw:   # fallback only: no 128-multiple tile divides h*w
        xr = jnp.pad(xr, ((0, 0), (0, 0), (0, 0), (0, hw_pad - hw)))

    if key_padding_mask is None:
        mask_i32 = jnp.zeros((b, n), jnp.int32)
    else:
        mask_i32 = key_padding_mask.astype(jnp.int32)

    # ----- fold fc1_q -> BatchNorm1d(eval) -> fc2 into one affine -----
    eps = 1e-5
    bn_scale = params["bn_gamma"] / jnp.sqrt(params["bn_var"] + eps)          # (C,)
    bn_shift = params["bn_beta"] - params["bn_mean"] * bn_scale               # (C,)
    w_comb = (params["wq"].T * bn_scale[None, :]) @ params["w2"].T            # (Din, C)
    b_comb = (params["bq"] * bn_scale + bn_shift) @ params["w2"].T + params["b2"]
    wc = w_comb.T                                                             # (C, Din)
    vecs = jnp.stack([b_comb, params["bk"]], axis=1)                          # (C, 2)
    wk_heads = params["wk"].reshape(n_head, d_k, din).transpose(0, 2, 1)      # (H, Din, d_k)

    # ----- fold LightweightConv1d (+ raw-reshape quirk + temporal mean) -----
    lw = jax.nn.softmax(params["lconv_w"][:, 0, :], axis=-1)                  # (H, 3)
    taps = lw[jnp.arange(din) % n_head]                                       # (Din, 3)
    tapsum = jnp.sum(taps, axis=1, keepdims=True)                             # (Din, 1)
    k_idx = jnp.arange(n * din)[None, :]                                      # flat (t*Din + ch)
    i_idx = jnp.arange(din)[:, None]                                          # conv-channel (raw-reshape) idx
    grp = (k_idx // n == i_idx).astype(jnp.float32)
    is_first = (k_idx == i_idx * n).astype(jnp.float32)
    is_last = (k_idx == i_idx * n + (n - 1)).astype(jnp.float32)
    # mean_t(conv)[i] = ((w0+w1+w2)*S_i - w0*x_i[N-1] - w2*x_i[0]) / N
    m_flat = (tapsum * grp - taps[:, 0:1] * is_last - taps[:, 2:3] * is_first) / n   # (Din, N*Din)

    inv_temp = 1.0 / (float(d_k) ** 0.5)
    kernel = functools.partial(_gltae_kernel, n_head=n_head, inv_temp=inv_temp)

    grid = (b, hw_pad // tile)
    feat, attn = pl.pallas_call(
        kernel,
        out_shape=(
            jax.ShapeDtypeStruct((b, c, hw_pad), jnp.float32),
            jax.ShapeDtypeStruct((b, n_head, n, hw_pad), jnp.float32),
        ),
        grid_spec=pltpu.PrefetchScalarGridSpec(
            num_scalar_prefetch=1,                       # (b, n) pad mask -> SMEM
            grid=grid,
            in_specs=[
                pl.BlockSpec((pl.Squeezed(), n, c, tile), lambda bi, i, m: (bi, 0, 0, i)),
                pl.BlockSpec((c, din), lambda bi, i, m: (0, 0)),               # folded q weight
                pl.BlockSpec((n_head, din, d_k), lambda bi, i, m: (0, 0, 0)),  # key weight / head
                pl.BlockSpec((c, 2), lambda bi, i, m: (0, 0)),                 # packed biases
                pl.BlockSpec((din, n * din), lambda bi, i, m: (0, 0)),         # folded conv map
            ],
            out_specs=(
                pl.BlockSpec((pl.Squeezed(), c, tile), lambda bi, i, m: (bi, 0, i)),
                pl.BlockSpec((pl.Squeezed(), n_head, n, tile), lambda bi, i, m: (bi, 0, 0, i)),
            ),
        ),
        compiler_params=pltpu.CompilerParams(
            dimension_semantics=("parallel", "parallel"),   # shards across v7x's 2 TCs
            vmem_limit_bytes=32 * 1024 * 1024,              # v5e scoped default is 16 MiB
        ),
    )(mask_i32, xr, wc, wk_heads, vecs, m_flat)

    # features: 'b c (h w) -> b c h w' is a free reshape (no transpose).
    feat = feat[:, :, :hw].reshape(b, c, h, w)
    # attention: reference layout (H * b*h*w, 1, N) still needs one relayout.
    # TODO(synk): consumers that can take (b, H, N, h*w) directly should skip it.
    p_attn = attn[:, :, :, :hw].transpose(1, 0, 3, 2).reshape(n_head * b * hw, 1, n)
    return {"features": feat, "attention_mask": p_attn}


def gltae_reference(x, key_padding_mask, params, *, n_head=1):
    """Pure-JAX mirror of the PyTorch forward (eval-mode BN, per-pixel mask)."""
    b, n, c, h, w = x.shape
    din = c // 2
    d_k = c // n_head
    dh = din // n_head
    bhw = b * h * w
    eps = 1e-5

    xr = jnp.transpose(x, (0, 3, 4, 1, 2)).reshape(bhw, n, c)
    x_ltae = xr[:, :, :din]
    x_conv = xr[:, :, din:]

    q = x_ltae @ params["wq"].T + params["bq"]                    # (bhw, n, C)
    q = q.mean(axis=1)                                            # (bhw, C)
    q = (q - params["bn_mean"]) / jnp.sqrt(params["bn_var"] + eps) * params["bn_gamma"] + params["bn_beta"]
    q = q @ params["w2"].T + params["b2"]                         # (bhw, C)
    q = q.reshape(bhw, n_head, d_k).transpose(1, 0, 2).reshape(n_head * bhw, d_k)

    k = x_ltae @ params["wk"].T + params["bk"]                    # (bhw, n, C)
    k = k.reshape(bhw, n, n_head, d_k).transpose(2, 0, 1, 3).reshape(n_head * bhw, n, d_k)
    v = jnp.concatenate(jnp.split(x_ltae, n_head, axis=-1), axis=0)   # (H*bhw, n, dh)

    attn = jnp.einsum("bd,bnd->bn", q, k)[:, None, :] / (d_k ** 0.5)  # (H*bhw, 1, n)
    if key_padding_mask is not None:
        m = jnp.repeat(key_padding_mask, h * w, axis=0)               # (bhw, n)
        m = jnp.tile(m, (n_head, 1))[:, None, :]                      # (H*bhw, 1, n)
        attn = jnp.where(m, -1e3, attn)
    attn = jax.nn.softmax(attn, axis=-1)
    out = jnp.einsum("bqn,bnd->bqd", attn, v)[:, 0, :]                # (H*bhw, dh)
    x_ltae_out = out.reshape(n_head, bhw, dh).transpose(1, 0, 2).reshape(bhw, din)

    xc = x_conv.reshape(bhw, din, n)                                  # raw-reshape quirk
    lw = jax.nn.softmax(params["lconv_w"][:, 0, :], axis=-1)
    w_ch = lw[jnp.arange(din) % n_head]                               # (din, 3)
    xpad = jnp.pad(xc, ((0, 0), (0, 0), (1, 1)))
    conv = (w_ch[None, :, 0:1] * xpad[:, :, 0:n]
            + w_ch[None, :, 1:2] * xpad[:, :, 1:n + 1]
            + w_ch[None, :, 2:3] * xpad[:, :, 2:n + 2])
    x_conv_out = conv.mean(axis=-1)                                   # (bhw, din)

    feat = jnp.concatenate([x_ltae_out, x_conv_out], axis=1)
    feat = feat.reshape(b, h, w, c).transpose(0, 3, 1, 2)
    return {"features": feat, "attention_mask": attn}


if __name__ == "__main__":
    # small shapes: inplanes=16, nhead=1, batch=2, seq=6, spatial=16x16 -> hw=256
    b, n, c, h, w = 2, 6, 16, 16, 16
    n_head = 1
    din, d_k = c // 2, c // n_head

    key = jax.random.PRNGKey(0)
    ks = jax.random.split(key, 13)
    params = {
        "wq": jax.random.normal(ks[0], (c, din), jnp.float32) * (2.0 / d_k) ** 0.5,
        "bq": jax.random.normal(ks[1], (c,), jnp.float32) * 0.1,
        "wk": jax.random.normal(ks[2], (c, din), jnp.float32) * (2.0 / d_k) ** 0.5,
        "bk": jax.random.normal(ks[3], (c,), jnp.float32) * 0.1,
        "bn_gamma": 1.0 + 0.1 * jax.random.normal(ks[4], (c,), jnp.float32),
        "bn_beta": 0.1 * jax.random.normal(ks[5], (c,), jnp.float32),
        "bn_mean": 0.1 * jax.random.normal(ks[6], (c,), jnp.float32),
        "bn_var": jnp.abs(jax.random.normal(ks[7], (c,), jnp.float32)) + 0.5,
        "w2": jax.random.normal(ks[8], (c, c), jnp.float32) * (1.0 / c ** 0.5),
        "b2": jax.random.normal(ks[9], (c,), jnp.float32) * 0.1,
        "lconv_w": jax.random.normal(ks[10], (n_head, 1, 3), jnp.float32),
    }

    x = jax.random.normal(ks[11], (b, n, c, h, w), jnp.float32)
    key_padding_mask = jnp.zeros((b, n), dtype=bool).at[1, n - 1].set(True).at[1, n - 2].set(True)

    out = gltae_decoding(x, key_padding_mask, params, n_head=n_head)
    jax.block_until_ready(out["features"])
    jax.block_until_ready(out["attention_mask"])

    ref = gltae_reference(x, key_padding_mask, params, n_head=n_head)
    df = float(jnp.max(jnp.abs(out["features"] - ref["features"])))
    da = float(jnp.max(jnp.abs(out["attention_mask"] - ref["attention_mask"])))
    assert out["features"].shape == (b, c, h, w)
    assert out["attention_mask"].shape == (n_head * b * h * w, 1, n)
    # Tolerance allows for the approximate EUP reciprocal used for the softmax
    # normalization (pl.reciprocal(approx=True)); with exact division both
    # outputs match the f32 reference to < 1e-3.
    assert df < 2e-2 and da < 1e-2, (df, da)
    print("KERNEL_OK")
</pallas_src>

<mosaic_0001>
module attributes {stable_mosaic.version = 11 : i64} {
  func.func @_gltae_kernel(%arg0: i32, %arg1: i32, %arg2: memref<2x6xi32, #tpu.memory_space<smem>>, %arg3: memref<1x6x16x256xf32, #tpu.memory_space<vmem>>, %arg4: memref<16x8xf32, #tpu.memory_space<vmem>>, %arg5: memref<1x8x16xf32, #tpu.memory_space<vmem>>, %arg6: memref<16x2xf32, #tpu.memory_space<vmem>>, %arg7: memref<8x48xf32, #tpu.memory_space<vmem>>, %arg8: memref<1x16x256xf32, #tpu.memory_space<vmem>>, %arg9: memref<1x1x6x256xf32, #tpu.memory_space<vmem>>) attributes {dimension_semantics = [#tpu.dimension_semantics<parallel>, #tpu.dimension_semantics<parallel>], iteration_bounds = array<i64: 2, 1>, scalar_prefetch = 1 : i64, scratch_operands = 0 : i64, tpu.core_type = #tpu.core_type<tc>, window_params = [{transform_indices = @transform_0, window_bounds = array<i64: 1, 6, 16, 256>}, {pipeline_mode = #tpu.pipeline_mode<synchronous>, transform_indices = @transform_1, window_bounds = array<i64: 16, 8>}, {pipeline_mode = #tpu.pipeline_mode<synchronous>, transform_indices = @transform_2, window_bounds = array<i64: 1, 8, 16>}, {pipeline_mode = #tpu.pipeline_mode<synchronous>, transform_indices = @transform_3, window_bounds = array<i64: 16, 2>}, {pipeline_mode = #tpu.pipeline_mode<synchronous>, transform_indices = @transform_4, window_bounds = array<i64: 8, 48>}, {transform_indices = @transform_5, window_bounds = array<i64: 1, 16, 256>}, {transform_indices = @transform_6, window_bounds = array<i64: 1, 1, 6, 256>}]} {
    %c0 = arith.constant 0 : index
    %c0_0 = arith.constant 0 : index
    %c0_1 = arith.constant 0 : index
    %c0_2 = arith.constant 0 : index
    %0 = vector.load %arg3[%c0, %c0_0, %c0_1, %c0_2] : memref<1x6x16x256xf32, #tpu.memory_space<vmem>>, vector<1x6x8x256xf32>
    %1 = vector.shape_cast %0 : vector<1x6x8x256xf32> to vector<6x8x256xf32>
    %cst = arith.constant dense<0.000000e+00> : vector<8x256xf32>
    %2 = vector.multi_reduction <add>, %1, %cst [0] : vector<6x8x256xf32> to vector<8x256xf32>
    %cst_3 = arith.constant 6.000000e+00 : f32
    %3 = vector.broadcast %cst_3 : f32 to vector<8x256xf32>
    %4 = arith.divf %2, %3 : vector<8x256xf32>
    %c0_4 = arith.constant 0 : index
    %c0_5 = arith.constant 0 : index
    %5 = vector.load %arg4[%c0_4, %c0_5] : memref<16x8xf32, #tpu.memory_space<vmem>>, vector<16x8xf32>
    %cst_6 = arith.constant dense<0.000000e+00> : vector<16x256xf32>
    %6 = tpu.matmul %5, %4, %cst_6 {dimension_numbers = #tpu.dot_dimension_numbers<[1], [0], [0], [1], [0, 0, 1, 1], [], []>} : vector<16x8xf32>, vector<8x256xf32>, vector<16x256xf32> -> vector<16x256xf32>
    %c0_7 = arith.constant 0 : index
    %c0_8 = arith.constant 0 : index
    %7 = vector.load %arg6[%c0_7, %c0_8] : memref<16x2xf32, #tpu.memory_space<vmem>>, vector<16x2xf32>
    %8 = vector.extract_strided_slice %7 {offsets = [0, 0], sizes = [16, 1], strides = [1, 1]} : vector<16x2xf32> to vector<16x1xf32>
    %9 = vector.broadcast %8 : vector<16x1xf32> to vector<16x256xf32>
    %10 = arith.addf %6, %9 : vector<16x256xf32>
    %11 = vector.extract_strided_slice %7 {offsets = [0, 1], sizes = [16, 1], strides = [1, 1]} : vector<16x2xf32> to vector<16x1xf32>
    %12 = arith.index_cast %arg0 : i32 to index
    %c0_9 = arith.constant 0 : index
    %13 = memref.load %arg2[%12, %c0_9] : memref<2x6xi32, #tpu.memory_space<smem>>
    %14 = arith.sitofp %13 : i32 to f32
    %15 = vector.broadcast %14 : f32 to vector<1x1xf32>
    %16 = arith.index_cast %arg0 : i32 to index
    %c1 = arith.constant 1 : index
    %17 = memref.load %arg2[%16, %c1] : memref<2x6xi32, #tpu.memory_space<smem>>
    %18 = arith.sitofp %17 : i32 to f32
    %19 = vector.broadcast %18 : f32 to vector<1x1xf32>
    %20 = arith.index_cast %arg0 : i32 to index
    %c2 = arith.constant 2 : index
    %21 = memref.load %arg2[%20, %c2] : memref<2x6xi32, #tpu.memory_space<smem>>
    %22 = arith.sitofp %21 : i32 to f32
    %23 = vector.broadcast %22 : f32 to vector<1x1xf32>
    %24 = arith.index_cast %arg0 : i32 to index
    %c3 = arith.constant 3 : index
    %25 = memref.load %arg2[%24, %c3] : memref<2x6xi32, #tpu.memory_space<smem>>
    %26 = arith.sitofp %25 : i32 to f32
    %27 = vector.broadcast %26 : f32 to vector<1x1xf32>
    %28 = arith.index_cast %arg0 : i32 to index
    %c4 = arith.constant 4 : index
    %29 = memref.load %arg2[%28, %c4] : memref<2x6xi32, #tpu.memory_space<smem>>
    %30 = arith.sitofp %29 : i32 to f32
    %31 = vector.broadcast %30 : f32 to vector<1x1xf32>
    %32 = arith.index_cast %arg0 : i32 to index
    %c5 = arith.constant 5 : index
    %33 = memref.load %arg2[%32, %c5] : memref<2x6xi32, #tpu.memory_space<smem>>
    %34 = arith.sitofp %33 : i32 to f32
    %35 = vector.broadcast %34 : f32 to vector<1x1xf32>
    %36 = tpu.concatenate %15, %19, %23, %27, %31, %35 in 0 : vector<1x1xf32>, vector<1x1xf32>, vector<1x1xf32>, vector<1x1xf32>, vector<1x1xf32>, vector<1x1xf32> -> vector<6x1xf32>
    %cst_10 = arith.constant 1.000000e+00 : f32
    %37 = vector.broadcast %cst_10 : f32 to vector<6x1xf32>
    %38 = arith.subf %37, %36 : vector<6x1xf32>
    %cst_11 = arith.constant -1.000000e+03 : f32
    %39 = vector.broadcast %cst_11 : f32 to vector<6x1xf32>
    %40 = arith.mulf %39, %36 : vector<6x1xf32>
    %c0_12 = arith.constant 0 : index
    %c0_13 = arith.constant 0 : index
    %c0_14 = arith.constant 0 : index
    %41 = vector.load %arg5[%c0_12, %c0_13, %c0_14] : memref<1x8x16xf32, #tpu.memory_space<vmem>>, vector<1x8x16xf32>
    %42 = vector.shape_cast %41 : vector<1x8x16xf32> to vector<8x16xf32>
    %cst_15 = arith.constant dense<0.000000e+00> : vector<8x256xf32>
    %43 = tpu.matmul %42, %10, %cst_15 {dimension_numbers = #tpu.dot_dimension_numbers<[1], [0], [0], [1], [0, 0, 1, 1], [], []>} : vector<8x16xf32>, vector<16x256xf32>, vector<8x256xf32> -> vector<8x256xf32>
    %44 = vector.broadcast %11 : vector<16x1xf32> to vector<16x256xf32>
    %45 = arith.mulf %44, %10 : vector<16x256xf32>
    %cst_16 = arith.constant dense<0.000000e+00> : vector<256xf32>
    %46 = vector.multi_reduction <add>, %45, %cst_16 [0] : vector<16x256xf32> to vector<256xf32>
    %47 = vector.shape_cast %46 : vector<256xf32> to vector<1x256xf32>
    %48 = vector.shape_cast %43 : vector<8x256xf32> to vector<1x8x256xf32>
    %49 = vector.broadcast %48 : vector<1x8x256xf32> to vector<6x8x256xf32>
    %50 = arith.mulf %1, %49 : vector<6x8x256xf32>
    %cst_17 = arith.constant dense<0.000000e+00> : vector<6x256xf32>
    %51 = vector.multi_reduction <add>, %50, %cst_17 [1] : vector<6x8x256xf32> to vector<6x256xf32>
    %52 = vector.broadcast %47 : vector<1x256xf32> to vector<6x256xf32>
    %53 = arith.addf %51, %52 : vector<6x256xf32>
    %cst_18 = arith.constant 2.500000e-01 : f32
    %54 = vector.broadcast %cst_18 : f32 to vector<6x256xf32>
    %55 = arith.mulf %53, %54 : vector<6x256xf32>
    %56 = vector.broadcast %38 : vector<6x1xf32> to vector<6x256xf32>
    %57 = arith.mulf %55, %56 : vector<6x256xf32>
    %58 = vector.broadcast %40 : vector<6x1xf32> to vector<6x256xf32>
    %59 = arith.addf %57, %58 : vector<6x256xf32>
    %cst_19 = arith.constant dense<0xFF800000> : vector<256xf32>
    %60 = vector.multi_reduction <maximumf>, %59, %cst_19 [0] : vector<6x256xf32> to vector<256xf32>
    %61 = vector.shape_cast %60 : vector<256xf32> to vector<1x256xf32>
    %62 = vector.broadcast %61 : vector<1x256xf32> to vector<6x256xf32>
    %63 = arith.subf %59, %62 : vector<6x256xf32>
    %64 = math.exp %63 : vector<6x256xf32>
    %cst_20 = arith.constant dense<0.000000e+00> : vector<256xf32>
    %65 = vector.multi_reduction <add>, %64, %cst_20 [0] : vector<6x256xf32> to vector<256xf32>
    %66 = vector.shape_cast %65 : vector<256xf32> to vector<1x256xf32>
    %67 = tpu.reciprocal %66 {approx = true} : vector<1x256xf32> -> vector<1x256xf32>
    %68 = vector.broadcast %67 : vector<1x256xf32> to vector<6x256xf32>
    %69 = arith.mulf %64, %68 : vector<6x256xf32>
    %c0_21 = arith.constant 0 : index
    %c0_22 = arith.constant 0 : index
    %c0_23 = arith.constant 0 : index
    %c0_24 = arith.constant 0 : index
    %70 = vector.load %arg9[%c0_21, %c0_22, %c0_23, %c0_24] : memref<1x1x6x256xf32, #tpu.memory_space<vmem>>, vector<1x1x6x256xf32>
    %71 = vector.shape_cast %70 : vector<1x1x6x256xf32> to vector<6x256xf32>
    %72 = vector.shape_cast %69 : vector<6x256xf32> to vector<1x1x6x256xf32>
    tpu.vector_store %arg9[%c0_21, %c0_22, %c0_23, %c0_24], %72 {strides = array<i32>} : memref<1x1x6x256xf32, #tpu.memory_space<vmem>>, vector<1x1x6x256xf32>,
    %73 = vector.shape_cast %69 : vector<6x256xf32> to vector<6x1x256xf32>
    %74 = vector.broadcast %73 : vector<6x1x256xf32> to vector<6x8x256xf32>
    %75 = arith.mulf %74, %1 : vector<6x8x256xf32>
    %cst_25 = arith.constant dense<0.000000e+00> : vector<8x256xf32>
    %76 = vector.multi_reduction <add>, %75, %cst_25 [0] : vector<6x8x256xf32> to vector<8x256xf32>
    %c0_26 = arith.constant 0 : index
    %c0_27 = arith.constant 0 : index
    %c0_28 = arith.constant 0 : index
    %77 = vector.load %arg8[%c0_26, %c0_27, %c0_28] : memref<1x16x256xf32, #tpu.memory_space<vmem>>, vector<1x8x256xf32>
    %78 = vector.shape_cast %77 : vector<1x8x256xf32> to vector<8x256xf32>
    %79 = vector.shape_cast %76 : vector<8x256xf32> to vector<1x8x256xf32>
    tpu.vector_store %arg8[%c0_26, %c0_27, %c0_28], %79 {strides = array<i32>} : memref<1x16x256xf32, #tpu.memory_space<vmem>>, vector<1x8x256xf32>,
    %c0_29 = arith.constant 0 : index
    %c0_30 = arith.constant 0 : index
    %c8 = arith.constant 8 : index
    %c0_31 = arith.constant 0 : index
    %80 = vector.load %arg3[%c0_29, %c0_30, %c8, %c0_31] : memref<1x6x16x256xf32, #tpu.memory_space<vmem>>, vector<1x6x8x256xf32>
    %81 = vector.shape_cast %80 : vector<1x6x8x256xf32> to vector<6x8x256xf32>
    %82 = vector.shape_cast %81 : vector<6x8x256xf32> to vector<48x256xf32>
    %c0_32 = arith.constant 0 : index
    %c0_33 = arith.constant 0 : index
    %83 = vector.load %arg7[%c0_32, %c0_33] : memref<8x48xf32, #tpu.memory_space<vmem>>, vector<8x48xf32>
    %cst_34 = arith.constant dense<0.000000e+00> : vector<8x256xf32>
    %84 = tpu.matmul %83, %82, %cst_34 {dimension_numbers = #tpu.dot_dimension_numbers<[1], [0], [0], [1], [0, 0, 1, 1], [], []>} : vector<8x48xf32>, vector<48x256xf32>, vector<8x256xf32> -> vector<8x256xf32>
    %c0_35 = arith.constant 0 : index
    %c8_36 = arith.constant 8 : index
    %c0_37 = arith.constant 0 : index
    %85 = vector.load %arg8[%c0_35, %c8_36, %c0_37] : memref<1x16x256xf32, #tpu.memory_space<vmem>>, vector<1x8x256xf32>
    %86 = vector.shape_cast %85 : vector<1x8x256xf32> to vector<8x256xf32>
    %87 = vector.shape_cast %84 : vector<8x256xf32> to vector<1x8x256xf32>
    tpu.vector_store %arg8[%c0_35, %c8_36, %c0_37], %87 {strides = array<i32>} : memref<1x16x256xf32, #tpu.memory_space<vmem>>, vector<1x8x256xf32>,
    return
  }
  func.func @transform_0(%arg0: i32, %arg1: i32, %arg2: memref<2x6xi32, #tpu.memory_space<smem>>) -> (i32, i32, i32, i32) {
    %c0_i32 = arith.constant 0 : i32
    %c0_i32_0 = arith.constant 0 : i32
    %c0_i32_1 = arith.constant 0 : i32
    return %arg0, %c0_i32, %c0_i32_0, %arg1 : i32, i32, i32, i32
  }
  func.func @transform_1(%arg0: i32, %arg1: i32, %arg2: memref<2x6xi32, #tpu.memory_space<smem>>) -> (i32, i32) {
    %c0_i32 = arith.constant 0 : i32
    %c0_i32_0 = arith.constant 0 : i32
    %c0_i32_1 = arith.constant 0 : i32
    return %c0_i32, %c0_i32_0 : i32, i32
  }
  func.func @transform_2(%arg0: i32, %arg1: i32, %arg2: memref<2x6xi32, #tpu.memory_space<smem>>) -> (i32, i32, i32) {
    %c0_i32 = arith.constant 0 : i32
    %c0_i32_0 = arith.constant 0 : i32
    %c0_i32_1 = arith.constant 0 : i32
    %c0_i32_2 = arith.constant 0 : i32
    return %c0_i32, %c0_i32_0, %c0_i32_1 : i32, i32, i32
  }
  func.func @transform_3(%arg0: i32, %arg1: i32, %arg2: memref<2x6xi32, #tpu.memory_space<smem>>) -> (i32, i32) {
    %c0_i32 = arith.constant 0 : i32
    %c0_i32_0 = arith.constant 0 : i32
    %c0_i32_1 = arith.constant 0 : i32
    return %c0_i32, %c0_i32_0 : i32, i32
  }
  func.func @transform_4(%arg0: i32, %arg1: i32, %arg2: memref<2x6xi32, #tpu.memory_space<smem>>) -> (i32, i32) {
    %c0_i32 = arith.constant 0 : i32
    %c0_i32_0 = arith.constant 0 : i32
    %c0_i32_1 = arith.constant 0 : i32
    return %c0_i32, %c0_i32_0 : i32, i32
  }
  func.func @transform_5(%arg0: i32, %arg1: i32, %arg2: memref<2x6xi32, #tpu.memory_space<smem>>) -> (i32, i32, i32) {
    %c0_i32 = arith.constant 0 : i32
    %c0_i32_0 = arith.constant 0 : i32
    return %arg0, %c0_i32, %arg1 : i32, i32, i32
  }
  func.func @transform_6(%arg0: i32, %arg1: i32, %arg2: memref<2x6xi32, #tpu.memory_space<smem>>) -> (i32, i32, i32, i32) {
    %c0_i32 = arith.constant 0 : i32
    %c0_i32_0 = arith.constant 0 : i32
    %c0_i32_1 = arith.constant 0 : i32
    return %arg0, %c0_i32, %c0_i32_0, %arg1 : i32, i32, i32, i32
  }
}

</mosaic_0001>

<bundles_post_ra>
// kernel: tpu_custom_call.1
= control target key start
LH: loop header
LB: loop body
LE: loop exit
PB: predicated region body
PF: predicated region fallthrough
CT: control target
= control target key end

     0   :  { %s1367_s27 = smov [#allocation3]   ;;  %s1790_s0 = inlined_call_operand.vmem [shape: s32[2,6], index: 0, kind: input, shape index: {}]   ;;  %s1791_s1 = inlined_call_operand.hbm [shape: f32[2,6,16,256], index: 1, kind: input, shape index: {}]   ;;  %s1792_s2 = inlined_call_operand.vmem [shape: f32[16,8], index: 2, kind: input, shape index: {}]   ;;  %s1793_s3 = inlined_call_operand.vmem [shape: f32[1,8,16], index: 3, kind: input, shape index: {}]   ;;  %s1794_s4 = inlined_call_operand.vmem [shape: f32[16,2], index: 4, kind: input, shape index: {}]   ;;  %s1795_s5 = inlined_call_operand.vmem [shape: f32[8,48], index: 5, kind: input, shape index: {}]   ;;  %s1796_s6 = inlined_call_operand.hbm [shape: f32[2,16,256], index: 6, kind: output, shape index: {0}]   ;;  %s1797_s7 = inlined_call_operand.vmem [shape: f32[2,1,6,256], index: 7, kind: output, shape index: {1}]  }
   0x1   :  { %1801 = sst [smem:[#allocation15_spill]] %s1791_s1  ;;  %s14_s26 = sshll.u32 %s1790_s0, 4  ;;  %s15_s26 = int_to_ptr.vmem [resolvable:$true] %s14_s26 }
   0x2   :  { %1802 = sst [smem:[#allocation16_spill]] %s1794_s4 }
   0x3   :  { %17 = dma.vmem_to_smem %s15_s26, 32, %s1367_s27, [#allocation2] }
   0x4   :  { %1333 = dma.done.wait [#allocation2], 32 }
   0x5   :  { %1334 = vsyncadd [#allocation2], 4294967264 }
   0x6   :  { %20 = sfence }
   0x7   :  { %21 = vsyncpa [#allocation5], 0 }
   0x8   :  { %23 = vsyncpa [#allocation5 + $0x1], 0 }
   0x9   :  { %24 = vsyncpa [#allocation6], 0 }
   0xa   :  { %26 = vsyncpa [#allocation6 + $0x1], 0  ;;  %s1418_s28 = smov 0   ;;  %s1420_s29 = smov 0  }
   0xb   :  { %s1422_s30 = smov 0   ;;  %s1424_s8 = smov 0  }
   0xc   :  { %s1426_s9 = smov 0   ;;  %s1428_s0 = smov 0  }
   0xd LB: > { %1803 = sst [smem:[#allocation11_spill]] %s1353_s30  ;;  %s1108_s10 = sadd.s32 4294967295, %s1365_s0   ;;  %s1365_s0 = sphi %s1428_s0, %s32_s0   ;;  %s1361_s9 = sphi %s1426_s9, %s1816_s9   ;;  %s1357_s8 = sphi %s1424_s8, %s1815_s8   ;;  %s1353_s30 = sphi %s1422_s30, %s1814_s30   ;;  %s1349_s29 = sphi %s1420_s29, %s1818_s29   ;;  %s1345_s28 = sphi %s1418_s28, %s1817_s28  }
   0xe   : > { %1804 = sst [smem:[#allocation12_spill]] %s1361_s9  ;;  %s1109_s11 = sadd.s32 4294967294, %s1365_s0  }
   0xf   : > { %s44_s12 = sadd.s32 1, %s1361_s9  ;;  %s53_s13 = sadd.s32 1, %s1353_s30 }
  0x10   : > { %p46_p0 = scmp.ge.s32.totalorder %s44_s12, 2  ;;  %p60_p1 = scmp.ne.s32.totalorder %s1353_s30, %s1349_s29 }
  0x11   : > { %p61_p2 = scmp.eq.s32.totalorder %s1365_s0, 0  ;;  %p66_p3 = scmp.ne.s32.totalorder %s1349_s29, %s1345_s28 }
  0x12   : > { %s1820_s12 = smov (%p46_p0, %s44_s12), 0  ;;  %p67_p5 = scmp.eq.s32.totalorder %s1108_s10, 0 }
  0x13   : > { %1805 = sst [smem:[#allocation13_spill]] %s1820_s12  ;;  %p1459_p4 = por %p61_p2, %p60_p1 }
  0x14   : > { %s48_s15 = ssub.s32 %s1361_s9, %s1820_s12  ;;  %p176_p6 = scmp.eq.s32.totalorder %s1108_s10, 1 }
  0x15   : > { %p51_p7 = scmp.eq.s32.totalorder %s48_s15, 0  ;;  %p1465_p8 = por %p67_p5, %p66_p3 }
  0x16   : > { %p1469_p9 = por %p176_p6, %p60_p1  ;;  %p182_p10 = scmp.eq.s32.totalorder %s1109_s11, 1 }
  0x17   : > { %s1474_s18 = scalar_select %p51_p7, %s1353_s30, %s53_s13  }
  0x18   : > { %p1476_p11 = por %p182_p10, %p66_p3  ;;  %p1111_p12 = scmp.ge.s32.totalorder %s1365_s0, 2 }
  0x19   : > { %1809 = sst [smem:[#allocation14_spill]] %s1474_s18  ;;  %p1148_p13 = scmp.lt.s32.totalorder %s1365_s0, 2 }
  0x1a   : > { %s242_s20 = sand.u32 1, %s1353_s30   ;;  %s1134_s22 = smul.u32 192, %s1361_s9 }
  0x1b   : > { %s1133_s21 = smul.u32 192, %s242_s20  ;;  %p1141_p0 = pnand %p1148_p13, %p1459_p4 }
  0x1c   : > { %s1811_s1 = sld [smem:[#allocation15_spill]]  ;;  %p1113_p1 = scmp.ge.s32.totalorder %s1365_s0, 1 }
  0x1d   : > { %s246_s26 = scalar_lea.vmem [#allocation4], %s1133_s21  ;;  %s243_s11 = scalar_lea.sflag [#allocation5], %s242_s20 }
  0x1e   : > { %s256_s27 = sshll.u32 %s246_s26, 4  ;;  %s1368_s13 = smov 256   ;;  %s257_s27 = int_to_ptr.vmem [resolvable:$true] %s256_s27 }
  0x1f   : > { %s1369_s15 = smov 16   ;;  %p264_p2 = scmp.lt.s32.totalorder %s1365_s0, 3 }
  0x21   : > { %p265_p3 = pnand %p1113_p1, %p264_p2 }
  0x22   : > { %s253_s25 = scalar_lea.hbm %s1811_s1, %s1134_s22  ;;  %s1492_s14 = sand.u32 (!%p265_p3), 1, %s1349_s29  }
  0x23   : > { %s254_s10 = sshll.u32 %s253_s25, 4  ;;  %268 = sbr.rel (%p265_p3) target bundleno = 448 (0x1c0), region = 40  ;;  %s255_s10 = int_to_ptr.hbm [resolvable:$true] %s254_s10 }
  0x24   : > { %1143 = dma.hbm_to_vmem [thread:$0]  (!%p1141_p0), %s255_s10, 3072, %s257_s27, %s243_s11, %s1368_s13, %s1368_s13, %s1369_s15  }
  0x25   : > { %s1135_s22 = smul.u32 (!%p265_p3), 192, %s1492_s14  ;;  %s271_s21 = scalar_lea.sflag (!%p265_p3), [#allocation5], %s1492_s14 }
  0x27   : > { %s1496_s23 = scalar_lea.vmem (!%p265_p3), [#allocation4], %s1135_s22 }
  0x28   : > { %1336 = dma.done.wait (%p1465_p8), %s271_s21, 3072  }
  0x29   : > { %1338 = vsyncadd (%p1465_p8), %s271_s21, 4294964224  ;;  %v1370_v0 = vmov 6.0   ;;  %v1371_v1 = vmov 0   ;;  %v1372_v2 = vmov 1   ;;  %v1503_v4 = vld [vmem:[%s1496_s23] sm:$0xff]  ;;  %v1517_v10 = vld [vmem:[%s1496_s23 + $0x8] sm:$0xff] }
  0x2a   : > { %1209 = vrcp.f32 %v1370_v0  ;;  %1206 = vset.pattern.permute.xlu0 %v1371_v1  ;;  %1207 = vset.pattern.permute.xlu1 %v1372_v2  ;;  %v1506_v5 = vld [vmem:[%s1496_s23 + $0x20] sm:$0xff]  ;;  %v1520_v11 = vld [vmem:[%s1496_s23 + $0x28] sm:$0xff]  ;;  %s1812_s4 = sld [smem:[#allocation16_spill]]  ;;  %vm370_vm1 = vcmask 64512   ;;  %s1121_s13 = sshll.u32 %s1357_s8, 7  ;;  %vm447_vm2 = vcmask 1040384  }
  0x2b   : > { %1208 = vset.pattern.permute.xlu2 %v1371_v1  ;;  %v1509_v6 = vld [vmem:[%s1496_s23 + $0x40] sm:$0xff]  ;;  %v337_v8 = vadd.f32 %v1506_v5, %v1503_v4  ;;  %v1523_v12 = vld [vmem:[%s1496_s23 + $0x48] sm:$0xff]  ;;  %v342_v15 = vadd.f32 %v1520_v11, %v1517_v10  ;;  %s427_s15 = sadd.s32 1, %s1121_s13  ;;  %s431_s22 = sadd.s32 2, %s1121_s13  ;;  %vm449_vm3 = vcmask 1041408   ;;  %vm451_vm4 = vcmask 1042432  }
  0x2c   : > { %v1512_v7 = vld [vmem:[%s1496_s23 + $0x60] sm:$0xff]  ;;  %v1532_v17 = vld [vmem:[%s1496_s23 + $0x68] sm:$0xff]  ;;  %s424_s21 = sld [smem:[#allocation3 + %s1121_s13]]  ;;  %s435_s16 = sadd.s32 3, %s1121_s13  ;;  %vm453_vm5 = vcmask 1043456   ;;  %vm455_vm6 = vcmask 1044480  }
  0x2d   : > { %v338_v13 = vadd.f32 %v337_v8, %v1509_v6  ;;  %v1529_v16 = vld [vmem:[%s1496_s23 + $0x80] sm:$0xff]  ;;  %v343_v21 = vadd.f32 %v342_v15, %v1523_v12  ;;  %v1546_v24 = vld [vmem:[%s1496_s23 + $0x88] sm:$0xff]  ;;  %s428_s20 = sld [smem:[#allocation3 + %s427_s15]]  ;;  %s439_s24 = sadd.s32 4, %s1121_s13  ;;  %vm460_vm7 = vcmask 130048   ;;  %v904_v1 = vld [vmem:[%s1496_s23 + $0xb0] sm:$0xff] }
  0x2e   : > { %v1543_v23 = vld [vmem:[%s1496_s23 + $0xa0] sm:$0xff]  ;;  %v1551_v28 = vld [vmem:[%s1496_s23 + $0xa8] sm:$0xff]  ;;  %s432_s25 = sld [smem:[#allocation3 + %s431_s22]]  ;;  %s443_s26 = sadd.s32 5, %s1121_s13  ;;  %v903_v15 = vld [vmem:[%s1496_s23 + $0x98] sm:$0xff]  ;;  %vm907_vm8 = vcmask 392192  }
  0x2f   : > { %v339_v19 = vadd.f32 %v338_v13, %v1512_v7  ;;  %v344_v27 = vadd.f32 %v343_v21, %v1532_v17  ;;  %v356_v34 = vld [vmem:[%s1792_s2] sm:$0xff]  ;;  %v357_v36 = vld [vmem:[%s1792_s2 + $0x8] sm:$0xff]  ;;  %s436_s27 = sld [smem:[#allocation3 + %s435_s16]]  ;;  %v902_v13 = vld [vmem:[%s1496_s23 + $0x90] sm:$0xff]  ;;  %vm765_vm9 = vcmask 1041409   ;;  %vm768_vm10 = vcmask 1042434  }
  0x30   : > { %v1210_v3 = vpop.eup %1209  ;;  %v359_v18 = vld [vmem:[%s1812_s4 + $0x8] sm:$0xff]  ;;  %v358_v22 = vld [vmem:[%s1812_s4] sm:$0xff]  ;;  %s440_s1 = sld [smem:[#allocation3 + %s439_s24]]  ;;  %v899_v21 = vld [vmem:[%s1496_s23 + $0x58] sm:$0xff]  ;;  %vm771_vm11 = vcmask 1043459   ;;  %vm774_vm12 = vcmask 1044484  }
  0x31   : > { %v348_v9 = vmul.f32 6.0, %v1210_v3  ;;  %367 = vperm.xlu0 %1206, %v359_v18   ;;  %vm352_vm0 = vweird.f32 %v1210_v3  ;;  %505 = vperm.xlu1 %1207, %v358_v22   ;;  %v340_v25 = vadd.f32 %v339_v19, %v1529_v16  ;;  %v345_v31 = vadd.f32 %v344_v27, %v1546_v24  ;;  %s444_s4 = sld [smem:[#allocation3 + %s443_s26]]  ;;  %v459_v0 = vld [vmem:[%s1793_s3] sm:$0xff]  ;;  %v901_v19 = vld [vmem:[%s1496_s23 + $0x78] sm:$0xff]  ;;  %p316_p4 = scmp.lt.s32.totalorder %s1357_s8, 1 }
  0x32   : > { %s425_s12 = scvt.s32.f32 %s424_s21  ;;  %v906_v27 = vld [vmem:[%s1795_s5] sm:$0xff]  ;;  %vm777_vm13 = vcmask 1045509   ;;  %vm791_vm14 = vcmask 1045504   ;;  %s1132_s16 = sshll.u32 %s1357_s8, 5 }
  0x33   : > { %v349_v14 = vsub.f32 1.0, %v348_v9  ;;  %v341_v29 = vadd.f32 %v340_v25, %v1543_v23  ;;  %v346_v33 = vadd.f32 %v345_v31, %v1551_v28  ;;  %s429_s9 = scvt.s32.f32 %s428_s20  ;;  %v905_v9 = vld [vmem:[%s1496_s23 + $0xb8] sm:$0xff] }
  0x34   : > { %s433_s18 = scvt.s32.f32 %s432_s25  ;;  %v426_v38 = vstv %s425_s12  ;;  %v897_v25 = vld [vmem:[%s1496_s23 + $0x38] sm:$0xff]  ;;  %s1114_s12 = sshll.u32 %s1492_s14, 5 }
  0x35   : > { %v350_v20 = vmul.f32 %v1210_v3, %v349_v14  ;;  %s437_s30 = scvt.s32.f32 %s436_s27  ;;  %v430_v39 = vstv %s429_s9  ;;  %s954_s27 = scalar_lea.sflag [#allocation6], %s1492_s14 }
  0x36   : > { %s441_s10 = scvt.s32.f32 %s440_s1  ;;  %v434_v40 = vstv %s433_s18  ;;  %v448_v43 = vsel %vm447_vm2, %v426_v38, %v430_v39  ;;  %s1709_s18 = scalar_lea.vmem [#allocation7], %s1114_s12 }
  0x37   : > { %v351_v26 = vadd.f32 %v1210_v3, %v350_v20  ;;  %s445_s11 = scvt.s32.f32 %s444_s4  ;;  %v438_v41 = vstv %s437_s30  ;;  %v450_v46 = vsel %vm449_vm3, %v448_v43, %v434_v40  ;;  %v898_v20 = vld [vmem:[%s1496_s23 + $0x50] sm:$0xff]  ;;  %s977_s25 = sshll.u32 %s1709_s18, 4  ;;  %s978_s25 = int_to_ptr.vmem [resolvable:$true] %s977_s25 }
  0x38   : > { %v442_v42 = vstv %s441_s10  ;;  %v452_v47 = vsel %vm451_vm4, %v450_v46, %v438_v41  ;;  %s1301_s30 = scalar_lea.hbm %s1796_s6, 64 }
  0x39   : > { %v353_v30 = vsel %vm352_vm0, %v1210_v3, %v351_v26  ;;  %362 = vperm.xlu0 %1206, %v358_v22   ;;  %509 = vperm.xlu1 %1207, %v359_v18   ;;  %v446_v45 = vstv %s445_s11  ;;  %v454_v49 = vsel %vm453_vm5, %v452_v47, %v442_v42  ;;  %v900_v18 = vld [vmem:[%s1496_s23 + $0x70] sm:$0xff] }
  0x3a   : > { %v354_v32 = vmul.f32 %v353_v30, %v341_v29  ;;  %v355_v35 = vmul.f32 %v353_v30, %v346_v33  ;;  %v456_v50 = vsel %vm455_vm6, %v454_v49, %v446_v45  ;;  %v896_v22 = vld [vmem:[%s1496_s23 + $0x30] sm:$0xff]  ;;  %v895_v29 = vld [vmem:[%s1496_s23 + $0x18] sm:$0xff] }
  0x3b   : > { %v457_v52 = vsub.f32 1.0, %v456_v50  ;;  %v458_v57 = vmul.f32 -1000.0, %v456_v50  ;;  %v894_v26 = vld [vmem:[%s1496_s23 + $0x10] sm:$0xff]  ;;  %s1715_s23 = scalar_select %p316_p4, %s1357_s8, 1 }
  0x3c   : > { %392 = vmatpush.msra.mxu0 %v354_v32  ;;  %415 = vmatpush.msra.mxu1 %v355_v35  ;;  %s976_s8 = scalar_lea.hbm %s1796_s6, %s1132_s16 }
  0x3d   : > { %1117 = vmatmul.msk.f32.vlgmr.msra.gmra.mxu0 %vm370_vm1, %v356_v34  ;;  %1119 = vmatmul.msk.f32.vlgmr.msra.gmra.mxu1 %vm370_vm1, %v356_v34  ;;  %s1131_s13 = sshll.u32 %s1715_s23, 4  ;;  %s979_s26 = sshll.u32 %s976_s8, 4  ;;  %s980_s26 = int_to_ptr.hbm [resolvable:$true] %s979_s26 }
  0x3e   : > { %640 = vperm.xlu2 %1208, %v457_v52   ;;  %s323_s21 = scalar_lea.vmem %s1797_s7, %s1131_s13  ;;  %s1295_s10 = sshra.s32 %s980_s26, 4  ;;  %s1296_s10 = int_to_ptr.hbm [resolvable:$true] %s1295_s10 }
  0x3f   : > { %s1297_s11 = scalar_lea.hbm %s1296_s10, 32  ;;  %p1302_p8 = scmp.lt.s32.totalorder %s1296_s10, %s1796_s6 }
  0x40   : > { %p1298_p5 = scmp.ne.s32.totalorder %s1296_s10, %s1297_s11  ;;  %p1303_p10 = scmp.lt.s32.totalorder %s1301_s30, %s1297_s11 }
  0x42   : > { %p1299_p6 = pnand %p1298_p5, %p1469_p9  ;;  %p1304_p13 = por %p1303_p10, %p1302_p8 }
  0x44   : > { %p1300_p7 = pneg %p1299_p6 }
  0x45   : > { %1118 = vmatmul.msk.f32.gmra.mxu0 %vm370_vm1, %v357_v36  ;;  %1120 = vmatmul.msk.f32.gmra.mxu1 %vm370_vm1, %v357_v36 }
  0x46   : > { %667 = vperm.xlu2 %1208, %v458_v57   ;;  %p1305_p0 = pnand %p1304_p13, %p1300_p7 }
  0x98   : > { %v1582_v36 = vpop.permute.xlu2 %640 }
  0x99   : > { %v643_v45 = vrot.slane %v1582_v36, 2  ;;  %v644_v46 = vrot.slane %v1582_v36, 3  ;;  %v645_v47 = vrot.slane %v1582_v36, 4  ;;  %v646_v49 = vrot.slane %v1582_v36, 5 }
  0xa0   : > { %v1584_v41 = vpop.permute.xlu2 %667 }
  0xa1   : > { %v669_v50 = vrot.slane %v1584_v41, 1  ;;  %v671_v52 = vrot.slane %v1584_v41, 3 }
  0xa3   : > { %v368_v37 = vpop.permute.xlu0 %367  ;;  %v506_v44 = vpop.permute.xlu1 %505 }
  0xab   : > { %v363_v53 = vpop.permute.xlu0 %362  ;;  %v510_v56 = vpop.permute.xlu1 %509 }
  0xba   : > { %v394_v48 = vpop.f32.mrf.mxu0  ;;  %v417_v51 = vpop.f32.mrf.mxu1 }
  0xbb   : > { %v395_v54 = vadd.f32 %v394_v48, %v363_v53  ;;  %v418_v58 = vadd.f32 %v417_v51, %v363_v53  ;;  %v670_v51 = vrot.slane %v1584_v41, 2 }
  0xbd   : > { %v512_v61 = vmul.f32 %v506_v44, %v395_v54  ;;  %v513_v2 = vmul.f32 %v506_v44, %v418_v58  ;;  %v642_v44 = vrot.slane %v1582_v36, 1 }
  0xc2   : > { %v397_v55 = vpop.f32.mrf.mxu0  ;;  %v420_v60 = vpop.f32.mrf.mxu1 }
  0xc3   : > { %v398_v59 = vadd.f32 %v397_v55, %v368_v37  ;;  %v421_v62 = vadd.f32 %v420_v60, %v368_v37  ;;  %v672_v60 = vrot.slane %v1584_v41, 4 }
  0xc5   : > { %v514_v63 = vmul.f32 %v510_v56, %v398_v59  ;;  %478 = vmatpush.msra.mxu2 %v398_v59  ;;  %v515_v3 = vmul.f32 %v510_v56, %v421_v62  ;;  %498 = vmatpush.msra.mxu3 %v421_v62 }
  0xc7   : > { %v516_v8 = vadd.f32 %v514_v63, %v512_v61  ;;  %479 = vmatpush.msra.mxu2 %v395_v54  ;;  %v523_v14 = vadd.f32 %v515_v3, %v513_v2  ;;  %499 = vmatpush.msra.mxu3 %v418_v58  ;;  %v673_v61 = vrot.slane %v1584_v41, 5 }
  0xc8   : > { %1122 = vmatmul.msk.f32.vlgmr.msra.gmra.mxu2 %vm460_vm7, %v459_v0  ;;  %1123 = vmatmul.msk.f32.vlgmr.msra.gmra.mxu3 %vm460_vm7, %v459_v0 }
  0xc9   : > { %921 = vmatpush.msrb.mxu2 %v904_v1  ;;  %941 = vmatpush.msrb.mxu3 %v905_v9  ;;  %v517_v30 = vrot.slane %v516_v8, 4  ;;  %v524_v31 = vrot.slane %v523_v14, 4 }
  0xcb   : > { %922 = vmatpush.msrb.mxu2 %v902_v13  ;;  %942 = vmatpush.msrb.mxu3 %v903_v15  ;;  %v518_v32 = vadd.f32 %v517_v30, %v516_v8  ;;  %v525_v33 = vadd.f32 %v524_v31, %v523_v14 }
  0xcd   : > { %923 = vmatpush.msrb.mxu2 %v900_v18  ;;  %943 = vmatpush.msrb.mxu3 %v901_v19  ;;  %v519_v34 = vrot.slane %v518_v32, 2  ;;  %v526_v35 = vrot.slane %v525_v33, 2 }
  0xcf   : > { %924 = vmatpush.msrb.mxu2 %v898_v20  ;;  %944 = vmatpush.msrb.mxu3 %v899_v21  ;;  %v520_v37 = vadd.f32 %v519_v34, %v518_v32  ;;  %v527_v38 = vadd.f32 %v526_v35, %v525_v33 }
  0xd1   : > { %925 = vmatpush.msrb.mxu2 %v896_v22  ;;  %945 = vmatpush.msrb.mxu3 %v897_v25  ;;  %v521_v39 = vrot.slane %v520_v37, 1  ;;  %v528_v40 = vrot.slane %v527_v38, 1 }
  0xd3   : > { %926 = vmatpush.msrb.mxu2 %v894_v26  ;;  %946 = vmatpush.msrb.mxu3 %v895_v29  ;;  %v1586_v42 = vadd.f32 %v521_v39, %v520_v37  ;;  %v1588_v43 = vadd.f32 %v528_v40, %v527_v38 }
  0xd4   : > { %1124 = vmatmul.msk.f32.vlgmr.msrb.gmra.mxu2 %vm907_vm8, %v906_v27  ;;  %1125 = vmatmul.msk.f32.vlgmr.msrb.gmra.mxu3 %vm907_vm8, %v906_v27 }
 0x14b   : > { %v481_v48 = vpop.f32.mrf.mxu2  ;;  %v501_v59 = vpop.f32.mrf.mxu3 }
 0x14c   : > { %v530_v53 = vmul.f32 %v481_v48, %v1503_v4  ;;  %v532_v54 = vmul.f32 %v481_v48, %v1506_v5  ;;  %v534_v55 = vmul.f32 %v481_v48, %v1509_v6  ;;  %v536_v56 = vmul.f32 %v481_v48, %v1512_v7 }
 0x14d   : > { %v538_v57 = vmul.f32 %v481_v48, %v1529_v16  ;;  %v540_v58 = vmul.f32 %v481_v48, %v1543_v23  ;;  %v531_v8 = vmul.f32 %v501_v59, %v1517_v10  ;;  %v533_v9 = vmul.f32 %v501_v59, %v1520_v11 }
 0x14e   : > { %v542_v62 = vrot.slane %v530_v53, 4  ;;  %v554_v63 = vrot.slane %v532_v54, 4  ;;  %v566_v0 = vrot.slane %v534_v55, 4  ;;  %v578_v1 = vrot.slane %v536_v56, 4 }
 0x14f   : > { %v590_v2 = vrot.slane %v538_v57, 4  ;;  %v602_v3 = vrot.slane %v540_v58, 4  ;;  %v535_v21 = vmul.f32 %v501_v59, %v1523_v12  ;;  %v537_v22 = vmul.f32 %v501_v59, %v1532_v17 }
 0x150   : > { %v543_v13 = vadd.f32 %v542_v62, %v530_v53  ;;  %v555_v14 = vadd.f32 %v554_v63, %v532_v54  ;;  %v567_v15 = vadd.f32 %v566_v0, %v534_v55  ;;  %v579_v18 = vadd.f32 %v578_v1, %v536_v56 }
 0x151   : > { %v591_v19 = vadd.f32 %v590_v2, %v538_v57  ;;  %v603_v20 = vadd.f32 %v602_v3, %v540_v58  ;;  %v539_v32 = vmul.f32 %v501_v59, %v1546_v24  ;;  %v541_v33 = vmul.f32 %v501_v59, %v1551_v28 }
 0x152   : > { %v544_v25 = vrot.slane %v543_v13, 2  ;;  %v556_v26 = vrot.slane %v555_v14, 2  ;;  %v568_v27 = vrot.slane %v567_v15, 2  ;;  %v580_v29 = vrot.slane %v579_v18, 2 }
 0x153   : > { %v592_v30 = vrot.slane %v591_v19, 2  ;;  %v604_v31 = vrot.slane %v603_v20, 2  ;;  %v548_v48 = vrot.slane %v531_v8, 4  ;;  %v560_v53 = vrot.slane %v533_v9, 4 }
 0x154   : > { %v545_v34 = vadd.f32 %v544_v25, %v543_v13  ;;  %v557_v35 = vadd.f32 %v556_v26, %v555_v14  ;;  %v569_v37 = vadd.f32 %v568_v27, %v567_v15  ;;  %v581_v38 = vadd.f32 %v580_v29, %v579_v18 }
 0x155   : > { %v593_v39 = vadd.f32 %v592_v30, %v591_v19  ;;  %v605_v40 = vadd.f32 %v604_v31, %v603_v20  ;;  %v549_v63 = vadd.f32 %v548_v48, %v531_v8  ;;  %v561_v0 = vadd.f32 %v560_v53, %v533_v9 }
 0x156   : > { %v546_v54 = vrot.slane %v545_v34, 1  ;;  %v558_v55 = vrot.slane %v557_v35, 1  ;;  %v570_v56 = vrot.slane %v569_v37, 1  ;;  %v582_v57 = vrot.slane %v581_v38, 1 }
 0x157   : > { %v594_v58 = vrot.slane %v593_v39, 1  ;;  %v606_v62 = vrot.slane %v605_v40, 1  ;;  %v550_v15 = vrot.slane %v549_v63, 2  ;;  %v562_v18 = vrot.slane %v561_v0, 2 }
 0x158   : > { %v547_v1 = vadd.f32 %v546_v54, %v545_v34  ;;  %v559_v2 = vadd.f32 %v558_v55, %v557_v35  ;;  %v571_v3 = vadd.f32 %v570_v56, %v569_v37  ;;  %v583_v59 = vadd.f32 %v582_v57, %v581_v38 }
 0x159   : > { %v595_v13 = vadd.f32 %v594_v58, %v593_v39  ;;  %v607_v14 = vadd.f32 %v606_v62, %v605_v40  ;;  %v572_v19 = vrot.slane %v535_v21, 4  ;;  %v584_v20 = vrot.slane %v537_v22, 4 }
 0x15a   : > { %v596_v25 = vrot.slane %v539_v32, 4  ;;  %v608_v26 = vrot.slane %v541_v33, 4  ;;  %v551_v27 = vadd.f32 %v550_v15, %v549_v63  ;;  %v563_v29 = vadd.f32 %v562_v18, %v561_v0 }
 0x15b   : > { %v614_v30 = vadd.f32 %v547_v1, %v1586_v42  ;;  %v616_v31 = vadd.f32 %v559_v2, %v1586_v42  ;;  %v573_v8 = vadd.f32 %v572_v19, %v535_v21  ;;  %v585_v9 = vadd.f32 %v584_v20, %v537_v22 }
 0x15c   : > { %v597_v34 = vadd.f32 %v596_v25, %v539_v32  ;;  %v609_v35 = vadd.f32 %v608_v26, %v541_v33  ;;  %v552_v37 = vrot.slane %v551_v27, 1  ;;  %v564_v38 = vrot.slane %v563_v29, 1 }
 0x15d   : > { %v618_v39 = vadd.f32 %v571_v3, %v1586_v42  ;;  %v620_v40 = vadd.f32 %v583_v59, %v1586_v42  ;;  %v574_v48 = vrot.slane %v573_v8, 2  ;;  %v586_v53 = vrot.slane %v585_v9, 2 }
 0x15e   : > { %v598_v54 = vrot.slane %v597_v34, 2  ;;  %v610_v55 = vrot.slane %v609_v35, 2  ;;  %v553_v56 = vadd.f32 %v552_v37, %v551_v27  ;;  %v565_v57 = vadd.f32 %v564_v38, %v563_v29 }
 0x15f   : > { %v622_v58 = vadd.f32 %v595_v13, %v1586_v42  ;;  %v624_v62 = vadd.f32 %v607_v14, %v1586_v42  ;;  %v575_v21 = vadd.f32 %v574_v48, %v573_v8  ;;  %v587_v22 = vadd.f32 %v586_v53, %v585_v9 }
 0x160   : > { %v599_v32 = vadd.f32 %v598_v54, %v597_v34  ;;  %v611_v33 = vadd.f32 %v610_v55, %v609_v35  ;;  %v615_v63 = vadd.f32 %v553_v56, %v1588_v43  ;;  %v617_v0 = vadd.f32 %v565_v57, %v1588_v43 }
 0x161   : > { %v626_v1 = vmul.f32 0.25, %v614_v30  ;;  %v628_v2 = vmul.f32 0.25, %v616_v31  ;;  %v576_v3 = vrot.slane %v575_v21, 1  ;;  %v588_v59 = vrot.slane %v587_v22, 1 }
 0x162   : > { %v600_v15 = vrot.slane %v599_v32, 1  ;;  %v612_v18 = vrot.slane %v611_v33, 1  ;;  %v627_v19 = vmul.f32 0.25, %v615_v63  ;;  %v629_v20 = vmul.f32 0.25, %v617_v0 }
 0x163   : > { %v630_v25 = vmul.f32 0.25, %v618_v39  ;;  %v632_v13 = vmul.f32 0.25, %v620_v40  ;;  %v577_v26 = vadd.f32 %v576_v3, %v575_v21  ;;  %v589_v42 = vadd.f32 %v588_v59, %v587_v22 }
 0x164   : > { %v601_v14 = vadd.f32 %v600_v15, %v599_v32  ;;  %v613_v27 = vadd.f32 %v612_v18, %v611_v33  ;;  %v634_v29 = vmul.f32 0.25, %v622_v58  ;;  %v636_v8 = vmul.f32 0.25, %v624_v62 }
 0x165   : > { %v653_v9 = vmul.f32 %v1582_v36, %v626_v1  ;;  %v654_v34 = vmul.f32 %v1582_v36, %v627_v19  ;;  %v619_v30 = vadd.f32 %v577_v26, %v1588_v43  ;;  %v621_v31 = vadd.f32 %v589_v42, %v1588_v43 }
 0x166   : > { %v623_v35 = vadd.f32 %v601_v14, %v1588_v43  ;;  %v625_v37 = vadd.f32 %v613_v27, %v1588_v43  ;;  %v655_v38 = vmul.f32 %v642_v44, %v628_v2  ;;  %v656_v39 = vmul.f32 %v642_v44, %v629_v20 }
 0x167   : > { %v657_v40 = vmul.f32 %v643_v45, %v630_v25  ;;  %v659_v48 = vmul.f32 %v644_v46, %v632_v13  ;;  %v631_v53 = vmul.f32 0.25, %v619_v30  ;;  %v633_v54 = vmul.f32 0.25, %v621_v31 }
 0x168   : > { %v635_v55 = vmul.f32 0.25, %v623_v35  ;;  %v637_v56 = vmul.f32 0.25, %v625_v37  ;;  %v661_v57 = vmul.f32 %v645_v47, %v634_v29  ;;  %v663_v43 = vmul.f32 %v646_v49, %v636_v8 }
 0x169   : > { %v680_v58 = vadd.f32 %v1584_v41, %v653_v9  ;;  %v681_v44 = vadd.f32 %v1584_v41, %v654_v34  ;;  %v658_v62 = vmul.f32 %v643_v45, %v631_v53  ;;  %v660_v21 = vmul.f32 %v644_v46, %v633_v54 }
 0x16a   : > { %v662_v22 = vmul.f32 %v645_v47, %v635_v55  ;;  %v664_v32 = vmul.f32 %v646_v49, %v637_v56  ;;  %v682_v33 = vadd.f32 %v669_v50, %v655_v38  ;;  %v683_v63 = vadd.f32 %v669_v50, %v656_v39 }
 0x16b   : > { %v684_v0 = vadd.f32 %v670_v51, %v657_v40  ;;  %v686_v45 = vadd.f32 %v671_v52, %v659_v48  ;;  %v685_v46 = vadd.f32 %v670_v51, %v658_v62  ;;  %v687_v47 = vadd.f32 %v671_v52, %v660_v21 }
 0x16c   : > { %v688_v36 = vadd.f32 %v672_v60, %v661_v57  ;;  %v689_v49 = vadd.f32 %v672_v60, %v662_v22  ;;  %v690_v50 = vadd.f32 %v673_v61, %v663_v43  ;;  %v692_v1 = vsel %vm447_vm2, %v680_v58, -inf }
 0x16d   : > { %v693_v2 = vsel %vm447_vm2, %v682_v33, -inf  ;;  %v691_v3 = vadd.f32 %v673_v61, %v664_v32  ;;  %v694_v51 = vsel %vm447_vm2, %v684_v0, -inf  ;;  %v696_v52 = vsel %vm447_vm2, %v686_v45, -inf }
 0x16e   : > { %v703_v59 = vsel %vm447_vm2, %v681_v44, -inf  ;;  %v695_v15 = vmax.f32 %v692_v1, %v694_v51  ;;  %v697_v18 = vmax.f32 %v693_v2, %v696_v52  ;;  %v704_v60 = vsel %vm447_vm2, %v683_v63, -inf }
 0x16f   : > { %v698_v19 = vsel %vm447_vm2, %v688_v36, -inf  ;;  %v700_v20 = vsel %vm447_vm2, %v690_v50, -inf  ;;  %v705_v25 = vsel %vm447_vm2, %v685_v46, -inf  ;;  %v707_v13 = vsel %vm447_vm2, %v687_v47, -inf }
 0x170   : > { %v699_v41 = vmax.f32 %v695_v15, %v698_v19  ;;  %v701_v61 = vmax.f32 %v697_v18, %v700_v20  ;;  %v706_v26 = vmax.f32 %v703_v59, %v705_v25  ;;  %v708_v42 = vmax.f32 %v704_v60, %v707_v13 }
 0x171   : > { %v709_v14 = vsel %vm447_vm2, %v689_v49, -inf  ;;  %v711_v27 = vsel %vm447_vm2, %v691_v3, -inf }
 0x172   : > { %v702_v29 = vmax.f32 %v699_v41, %v701_v61  ;;  %v710_v8 = vmax.f32 %v706_v26, %v709_v14  ;;  %v712_v9 = vmax.f32 %v708_v42, %v711_v27 }
 0x174   : > { %v713_v34 = vmax.f32 %v710_v8, %v712_v9  ;;  %v714_v30 = vperm.slane %v702_v29, 0 }
 0x176   : > { %v715_v31 = vperm.slane %v713_v34, 0  ;;  %v716_v35 = vsub.f32 %v680_v58, %v714_v30  ;;  %v718_v37 = vsub.f32 %v682_v33, %v714_v30  ;;  %v720_v38 = vsub.f32 %v684_v0, %v714_v30 }
 0x177   : > { %v722_v53 = vsub.f32 %v686_v45, %v714_v30  ;;  %v724_v62 = vsub.f32 %v688_v36, %v714_v30  ;;  %v726_v1 = vsub.f32 %v690_v50, %v714_v30 }
 0x178   : > { %v717_v39 = vsub.f32 %v681_v44, %v715_v31  ;;  %v719_v40 = vsub.f32 %v683_v63, %v715_v31  ;;  %v721_v48 = vsub.f32 %v685_v46, %v715_v31  ;;  %v728_v54 = vmul.f32 1.442695, %v716_v35 }
 0x179   : > { %v732_v55 = vmul.f32 1.442695, %v718_v37  ;;  %v723_v56 = vsub.f32 %v687_v47, %v715_v31  ;;  %v736_v21 = vmul.f32 1.442695, %v720_v38  ;;  %v725_v22 = vsub.f32 %v689_v49, %v715_v31 }
 0x17a   : > { %v730_v57 = vmul.f32 1.442695, %v717_v39  ;;  %v734_v43 = vmul.f32 1.442695, %v719_v40  ;;  %1211 = vpow2.f32 %v728_v54  ;;  %v738_v32 = vmul.f32 1.442695, %v721_v48 }
 0x17b   : > { %v740_v58 = vmul.f32 1.442695, %v722_v53  ;;  %v727_v33 = vsub.f32 %v691_v3, %v715_v31  ;;  %v742_v44 = vmul.f32 1.442695, %v723_v56  ;;  %v744_v63 = vmul.f32 1.442695, %v724_v62 }
 0x17c   : > { %1213 = vpow2.f32 %v730_v57  ;;  %v746_v0 = vmul.f32 1.442695, %v725_v22  ;;  %v748_v46 = vmul.f32 1.442695, %v726_v1 }
 0x17d   : > { %1215 = vpow2.f32 %v732_v55  ;;  %v750_v36 = vmul.f32 1.442695, %v727_v33  ;;  %v928_v33 = vpop.f32.mrf.mxu2 }
 0x17e   : > { %1217 = vpow2.f32 %v734_v43  ;;  %951 = vst [vmem:[%s1709_s18 + $0x10] sm:$0xff] %v928_v33 }
 0x17f   : > { %1219 = vpow2.f32 %v736_v21 }
 0x180   : > { %1221 = vpow2.f32 %v738_v32  ;;  %v1680_v45 = vpop.eup %1211 }
 0x181   : > { %1223 = vpow2.f32 %v740_v58 }
 0x182   : > { %v1682_v47 = vpop.eup %1213  ;;  %1225 = vpow2.f32 %v742_v44  ;;  %v948_v44 = vpop.f32.mrf.mxu3 }
 0x183   : > { %v1684_v49 = vpop.eup %1215  ;;  %1227 = vpow2.f32 %v744_v63  ;;  %952 = vst [vmem:[%s1709_s18 + $0x18] sm:$0xff] %v948_v44 }
 0x184   : > { %v1686_v50 = vpop.eup %1217  ;;  %1229 = vpow2.f32 %v746_v0  ;;  %v764_v2 = vrot.slane %v1684_v49, 7 }
 0x185   : > { %v1689_v3 = vpop.eup %1219  ;;  %1231 = vpow2.f32 %v748_v46  ;;  %v779_v51 = vrot.slane %v1686_v50, 7 }
 0x186   : > { %v1692_v52 = vpop.eup %1221  ;;  %1233 = vpow2.f32 %v750_v36  ;;  %v766_v59 = vsel %vm765_vm9, %v764_v2, %v1680_v45  ;;  %v767_v15 = vrot.slane %v1689_v3, 6 }
 0x187   : > { %v1224_v18 = vpop.eup %1223  ;;  %v780_v60 = vsel %vm765_vm9, %v779_v51, %v1682_v47  ;;  %v781_v19 = vrot.slane %v1692_v52, 6 }
 0x188   : > { %v1226_v20 = vpop.eup %1225  ;;  %v769_v25 = vsel %vm768_vm10, %v767_v15, %v766_v59  ;;  %v770_v13 = vrot.slane %v1224_v18, 5 }
 0x189   : > { %v1228_v41 = vpop.eup %1227  ;;  %v782_v61 = vsel %vm768_vm10, %v781_v19, %v780_v60  ;;  %v783_v26 = vrot.slane %v1226_v20, 5 }
 0x18a   : > { %v1230_v42 = vpop.eup %1229  ;;  %v772_v14 = vsel %vm771_vm11, %v770_v13, %v769_v25  ;;  %v773_v27 = vrot.slane %v1228_v41, 4 }
 0x18b   : > { %v1232_v29 = vpop.eup %1231  ;;  %v784_v8 = vsel %vm771_vm11, %v783_v26, %v782_v61  ;;  %v785_v9 = vrot.slane %v1230_v42, 4 }
 0x18c   : > { %v1234_v34 = vpop.eup %1233  ;;  %v775_v30 = vsel %vm774_vm12, %v773_v27, %v772_v14  ;;  %v776_v31 = vrot.slane %v1232_v29, 3 }
 0x18d   : > { %v786_v35 = vsel %vm774_vm12, %v785_v9, %v784_v8  ;;  %v787_v37 = vrot.slane %v1234_v34, 3 }
 0x18e   : > { %v778_v38 = vsel %vm777_vm13, %v776_v31, %v775_v30 }
 0x18f   : > { %v788_v39 = vsel %vm777_vm13, %v787_v37, %v786_v35  ;;  %v792_v40 = vsel %vm791_vm14, %v778_v38, 0.0 }
 0x190   : > { %v793_v48 = vrot.slane %v792_v40, 4  ;;  %v799_v53 = vsel %vm791_vm14, %v788_v39, 0.0 }
 0x191   : > { %v800_v54 = vrot.slane %v799_v53, 4 }
 0x192   : > { %v794_v55 = vadd.f32 %v793_v48, %v792_v40 }
 0x193   : > { %v801_v56 = vadd.f32 %v800_v54, %v799_v53 }
 0x194   : > { %v795_v57 = vrot.slane %v794_v55, 2 }
 0x195   : > { %v802_v43 = vrot.slane %v801_v56, 2 }
 0x196   : > { %v796_v62 = vadd.f32 %v795_v57, %v794_v55 }
 0x197   : > { %v803_v21 = vadd.f32 %v802_v43, %v801_v56 }
 0x198   : > { %v797_v22 = vrot.slane %v796_v62, 1 }
 0x199   : > { %v804_v32 = vrot.slane %v803_v21, 1 }
 0x19a   : > { %v798_v1 = vadd.f32 %v797_v22, %v796_v62 }
 0x19b   : > { %v805_v58 = vadd.f32 %v804_v32, %v803_v21 }
 0x19c   : > { %1235 = vrcp.f32 %v798_v1 }
 0x19d   : > { %1237 = vrcp.f32 %v805_v58 }
 0x1a2   : > { %v1236_v63 = vpop.eup %1235 }
 0x1a3   : > { %v1238_v0 = vpop.eup %1237  ;;  %v808_v46 = vperm.slane %v1236_v63, 0 }
 0x1a4   : > { %v809_v36 = vperm.slane %v1238_v0, 0 }
 0x1a5   : > { %v810_v2 = vmul.f32 %v1680_v45, %v808_v46  ;;  %v812_v51 = vmul.f32 %v1684_v49, %v808_v46  ;;  %v814_v59 = vmul.f32 %v1689_v3, %v808_v46  ;;  %v816_v15 = vmul.f32 %v1224_v18, %v808_v46 }
 0x1a6   : > { %v811_v60 = vmul.f32 %v1682_v47, %v809_v36  ;;  %v813_v19 = vmul.f32 %v1686_v50, %v809_v36  ;;  %v815_v25 = vmul.f32 %v1692_v52, %v809_v36  ;;  %v817_v13 = vmul.f32 %v1226_v20, %v809_v36 }
 0x1a7   : > { %v818_v61 = vmul.f32 %v1228_v41, %v808_v46  ;;  %v819_v26 = vmul.f32 %v1230_v42, %v809_v36  ;;  %v820_v14 = vmul.f32 %v1232_v29, %v808_v46  ;;  %v821_v27 = vmul.f32 %v1234_v34, %v809_v36 }
 0x1a8   : > { %v834_v8 = vrot.slane %v812_v51, 7  ;;  %v836_v9 = vrot.slane %v814_v59, 6  ;;  %v838_v45 = vrot.slane %v816_v15, 5  ;;  %v844_v30 = vrot.slane %v813_v19, 7 }
 0x1a9   : > { %v840_v49 = vrot.slane %v818_v61, 4  ;;  %v842_v31 = vrot.slane %v820_v14, 3  ;;  %v846_v3 = vrot.slane %v815_v25, 6  ;;  %v848_v18 = vrot.slane %v817_v13, 5 }
 0x1aa   : > { %v835_v47 = vsel %vm765_vm9, %v834_v8, %v810_v2  ;;  %v845_v50 = vsel %vm765_vm9, %v844_v30, %v811_v60  ;;  %v850_v35 = vrot.slane %v819_v26, 4  ;;  %v852_v52 = vrot.slane %v821_v27, 3 }
 0x1ab   : > { %v837_v20 = vsel %vm768_vm10, %v836_v9, %v835_v47  ;;  %v847_v41 = vsel %vm768_vm10, %v846_v3, %v845_v50  ;;  %v858_v42 = vperm.slane %v810_v2, 0  ;;  %v859_v29 = vperm.slane %v811_v60, 0 }
 0x1ac   : > { %v839_v34 = vsel %vm771_vm11, %v838_v45, %v837_v20  ;;  %v849_v37 = vsel %vm771_vm11, %v848_v18, %v847_v41  ;;  %v860_v38 = vperm.slane %v812_v51, 0  ;;  %v861_v39 = vperm.slane %v813_v19, 0 }
 0x1ad   : > { %v841_v40 = vsel %vm774_vm12, %v840_v49, %v839_v34  ;;  %v851_v48 = vsel %vm774_vm12, %v850_v35, %v849_v37  ;;  %v862_v55 = vperm.slane %v814_v59, 0  ;;  %v863_v56 = vperm.slane %v815_v25, 0 }
 0x1ae   : > { %v843_v53 = vsel %vm777_vm13, %v842_v31, %v841_v40  ;;  %v853_v54 = vsel %vm777_vm13, %v852_v52, %v851_v48  ;;  %v870_v57 = vmul.f32 %v858_v42, %v1503_v4  ;;  %v871_v43 = vmul.f32 %v859_v29, %v1517_v10 }
 0x1af   : > { %856 = vst [vmem:[%s323_s21] sm:$0x3f] %v843_v53  ;;  %v872_v62 = vmul.f32 %v860_v38, %v1506_v5  ;;  %v873_v21 = vmul.f32 %v861_v39, %v1520_v11  ;;  %v864_v22 = vperm.slane %v816_v15, 0  ;;  %v865_v32 = vperm.slane %v817_v13, 0 }
 0x1b0   : > { %857 = vst [vmem:[%s323_s21 + $0x8] sm:$0x3f] %v853_v54  ;;  %v866_v1 = vperm.slane %v818_v61, 0  ;;  %v867_v58 = vperm.slane %v819_v26, 0  ;;  %v874_v33 = vmul.f32 %v862_v55, %v1509_v6  ;;  %v875_v44 = vmul.f32 %v863_v56, %v1523_v12 }
 0x1b1   : > { %v882_v63 = vadd.f32 %v872_v62, %v870_v57  ;;  %v887_v0 = vadd.f32 %v873_v21, %v871_v43  ;;  %v868_v4 = vperm.slane %v820_v14, 0  ;;  %v869_v46 = vperm.slane %v821_v27, 0 }
 0x1b2   : > { %v876_v10 = vmul.f32 %v864_v22, %v1512_v7  ;;  %v877_v5 = vmul.f32 %v865_v32, %v1532_v17  ;;  %v878_v6 = vmul.f32 %v866_v1, %v1529_v16  ;;  %v879_v12 = vmul.f32 %v867_v58, %v1546_v24 }
 0x1b3   : > { %v883_v11 = vadd.f32 %v882_v63, %v874_v33  ;;  %v888_v36 = vadd.f32 %v887_v0, %v875_v44  ;;  %v880_v7 = vmul.f32 %v868_v4, %v1543_v23  ;;  %v881_v17 = vmul.f32 %v869_v46, %v1551_v28 }
 0x1b5   : > { %v884_v2 = vadd.f32 %v883_v11, %v876_v10  ;;  %v889_v51 = vadd.f32 %v888_v36, %v877_v5 }
 0x1b7   : > { %v885_v59 = vadd.f32 %v884_v2, %v878_v6  ;;  %v890_v15 = vadd.f32 %v889_v51, %v879_v12 }
 0x1b9   : > { %v886_v60 = vadd.f32 %v885_v59, %v880_v7  ;;  %v891_v19 = vadd.f32 %v890_v15, %v881_v17 }
 0x1bb   : > { %892 = vst [vmem:[%s1709_s18] sm:$0xff] %v886_v60 }
 0x1bc   : > { %893 = vst [vmem:[%s1709_s18 + $0x8] sm:$0xff] %v891_v19 }
 0x1bd   : > { %1308 = shalt.err (!%p1305_p0)
}
 0x1be   : > { %s1373_s14 = smov 256   ;;  %s1374_s18 = smov 16  }
 0x1bf   : > { %1138 = dma.vmem_to_hbm [thread:$0]  (%p1469_p9), %s978_s25, 512, %s980_s26, %s954_s27, %s1373_s14, %s1373_s14, %s1374_s18  }
 0x1c0 PF: > { %s998_s23 = sand.u32 1, %s1345_s28   ;;  %p1145_p1 = pnand %p1111_p12, %p1476_p11 }
 0x1c1   : > { %s999_s13 = scalar_lea.sflag [#allocation6], %s998_s23 }
 0x1c2   : > { %p1146_p2 = pneg %p1145_p1 }
 0x1c4   : > { %1340 = dma.done.wait (%p1146_p2), %s999_s13, 512  }
 0x1c5   : > { %1342 = vsyncadd (%p1146_p2), %s999_s13, 4294966784  ;;  %s32_s0 = sadd.s32 1, %s1365_s0   ;;  %s1813_s15 = sld [smem:[#allocation11_spill]] }
 0x1c6   : > { %p29_p3 = scmp.ge.s32.totalorder %s32_s0, 4   ;;  %s1814_s30 = sld [smem:[#allocation14_spill]] }
 0x1c7   : > { %s1815_s8 = sld [smem:[#allocation12_spill]]  ;;  %s1817_s28 = smov %s1349_s29 }
 0x1c8   : > { %s1816_s9 = sld [smem:[#allocation13_spill]]  ;;  %31 = sbr.rel (!%p29_p3) target bundleno = 13 (0xd), region = 97 }
 0x1cb   : > { %s1818_s29 = smov %s1813_s15 }
 0x1cd   :  { %1017 = vsyncpa [#allocation5], 1 }
 0x1ce   :  { %1019 = vsyncpa [#allocation5 + $0x1], 1 }
 0x1cf   :  { %1020 = vsyncpa [#allocation6], 1 }
 0x1d0   :  { %1022 = vsyncpa [#allocation6 + $0x1], 1 }

</bundles_post_ra>
